<compile_context>
chip_gen: v7x
topology: tpu7x:2x2x1
jax: 0.10.0
libtpu: 0.0.40
codegen_flags: <defaults>
</compile_context>

<pallas_src>
import math
from functools import partial

import jax
import jax.numpy as jnp
from jax import lax
from jax.experimental import pallas as pl
from jax.experimental.pallas import tpu as pltpu


def _sinkhorn_kernel(x_ref, y_ref, cost_ref, pi_ref, c_ref, *,
                     eps, n_chunks, chunk, thresh):
    # One grid program == one batch element (batch dim squeezed by BlockSpec).
    x = x_ref[...].astype(jnp.float32)          # (P1, D)
    y = y_ref[...].astype(jnp.float32)          # (P2, D)
    P1 = x.shape[0]
    P2 = y.shape[0]

    # ---- cost matrix on the MXU: C_ij = ||x_i||^2 + ||y_j||^2 - 2 <x_i, y_j>
    yT = y.T                                                       # (D, P2)
    xy = jnp.dot(x, yT, preferred_element_type=jnp.float32)        # (P1, P2)
    xx = jnp.sum(x * x, axis=-1, keepdims=True)                    # (P1, 1)
    yy = jnp.sum(yT * yT, axis=0, keepdims=True)                   # (1, P2)
    # Clamp: the Gram trick can go slightly negative for near-coincident
    # points, unlike the reference sum of squared differences.
    C = jnp.maximum(xx + yy - 2.0 * xy, 0.0)
    c_ref[...] = C

    inv_eps = 1.0 / eps
    # Only -C/eps stays live through the loop; C is re-read from c_ref at the end.
    Ce = C * (-inv_eps)

    # mu / nu are uniform, so log(mu + 1e-8) is a compile-time constant.
    log_mu = float(math.log(1.0 / P1 + 1e-8))
    log_nu = float(math.log(1.0 / P2 + 1e-8))

    # Scaled potentials f = u/eps (P1,1), g = v/eps (1,P2):
    #   M_ij = (-C_ij + u_i + v_j)/eps = Ce_ij + f_i + g_j   (no divide in loop)
    def M(f, g):
        return Ce + f + g

    def lse(m, axis):
        mmax = jnp.max(m, axis=axis, keepdims=True)
        return mmax + jnp.log(jnp.sum(jnp.exp(m - mmax), axis=axis, keepdims=True))

    # ---- log-domain Sinkhorn; `chunk` updates per early-stop check so the
    # reduce-to-scalar + branch sync is paid once per chunk, not per iteration.
    def cond_fn(carry):
        it, _, _, err = carry
        return jnp.logical_and(it < n_chunks, err >= thresh)

    def body_fn(carry):
        it, f, g, _ = carry

        def step(_, s):
            f, g, _ = s
            f_prev = f
            f = (log_mu - lse(M(f, g), axis=-1)) + f    # row update  (P1, 1)
            g = (log_nu - lse(M(f, g), axis=-2)) + g    # col update  (1, P2)
            return (f, g, f_prev)

        f, g, f_prev = lax.fori_loop(0, chunk, step, (f, g, f), unroll=True)
        # err in "u" units (u = eps*f), from the last single update, for THIS
        # batch element (per-element early stop; torch uses the batch mean).
        err = eps * jnp.sum(jnp.abs(f - f_prev))
        return (it + 1, f, g, err)

    f0 = jnp.zeros((P1, 1), jnp.float32)
    g0 = jnp.zeros((1, P2), jnp.float32)
    init = (jnp.array(0, jnp.int32), f0, g0, jnp.array(jnp.inf, jnp.float32))
    _, f, g, _ = lax.while_loop(cond_fn, body_fn, init)

    # ---- transport plan and per-element cost ----
    pi = jnp.exp(M(f, g))                                # (P1, P2)
    pi_ref[...] = pi
    total = jnp.sum(pi * c_ref[...])                     # C read back (exact)
    # Lane-dense padded store (unmasked vst); wrapper slices [:, 0, 0].
    cost_ref[...] = jnp.broadcast_to(total, cost_ref.shape)


def _vmem_limit_bytes(estimate):
    """Generation-aware VMEM cap: floor 32 MiB, ceiling ~7/8 of physical VMEM."""
    try:
        cap = pltpu.get_tpu_info().vmem_capacity_bytes
    except Exception:           # conservative fallback (v7x per-core VMEM)
        cap = 64 << 20
    return int(min(max(int(estimate), 32 << 20), cap * 7 // 8))


def sinkhorn_distance(x, y, *, eps, max_iter, reduction='none',
                      thresh=0.1, err_check_every=5):
    """JAX/Pallas equivalent of SinkhornDistance(eps, max_iter, reduction)(x, y)."""
    squeeze_batch = (x.ndim == 2)
    if squeeze_batch:
        x, y = x[None], y[None]
    assert x.ndim == 3 and y.ndim == 3, "expected (N, P, D) point clouds"
    N, P1, D = x.shape
    N2, P2, D2 = y.shape
    assert N == N2 and D == D2

    max_iter = int(max_iter)
    chunk = max(1, min(int(err_check_every), max_iter)) if max_iter > 0 else 1
    n_chunks = -(-max_iter // chunk)
    # TODO(synk): if max_iter % chunk != 0 the last chunk may overshoot max_iter
    # by up to chunk-1 iterations (the early stop usually fires well before).

    kernel = partial(_sinkhorn_kernel, eps=float(eps), n_chunks=n_chunks,
                     chunk=chunk, thresh=float(thresh))

    # Per-program live set: double-buffered inputs + ~10 (P1,P2) f32 temporaries
    # (Ce, M, exp, pi) + double-buffered outputs, plus headroom for Mosaic scratch.
    blk = 4 * P1 * P2
    est = (2 * 4 * (P1 * D + P2 * D) + 10 * blk + 2 * (2 * blk + 4 * 128)
           + (4 << 20))
    vmem_limit = _vmem_limit_bytes(est)

    cost_pad, pi, C = pl.pallas_call(
        kernel,
        grid=(N,),                                   # one program per batch element
        in_specs=[
            pl.BlockSpec((None, P1, D), lambda b: (b, 0, 0)),
            pl.BlockSpec((None, P2, D), lambda b: (b, 0, 0)),
        ],
        out_specs=(
            pl.BlockSpec((None, 1, 128), lambda b: (b, 0, 0)),   # padded cost row
            pl.BlockSpec((None, P1, P2), lambda b: (b, 0, 0)),
            pl.BlockSpec((None, P1, P2), lambda b: (b, 0, 0)),
        ),
        out_shape=(
            jax.ShapeDtypeStruct((N, 1, 128), jnp.float32),  # cost (lane-dense pad)
            jax.ShapeDtypeStruct((N, P1, P2), jnp.float32),  # pi
            jax.ShapeDtypeStruct((N, P1, P2), jnp.float32),  # C
        ),
        compiler_params=pltpu.CompilerParams(
            dimension_semantics=("parallel",),       # megacore-shards the batch (v7x)
            vmem_limit_bytes=vmem_limit),
    )(x, y)

    cost = cost_pad[:, 0, 0]
    if squeeze_batch:
        cost, pi, C = cost[0], pi[0], C[0]
    if reduction == 'mean':
        cost = jnp.mean(cost)
    elif reduction == 'sum':
        cost = jnp.sum(cost)
    return cost, pi, C


# ----------------------------------------------------------------------------
# Pure-JAX reference for validation.  It mirrors the kernel's stopping rule
# (per batch element, error checked every `chunk` iterations) in the unscaled
# u/v domain with the exact |x - y|^2 cost matrix.  NOTE: the PyTorch module
# checks the batch-mean error every iteration -- see kernel header.
# ----------------------------------------------------------------------------
def _reference_single(xb, yb, eps, max_iter, thresh, chunk):
    d = xb[:, None, :] - yb[None, :, :]
    C = jnp.sum(d * d, axis=-1)
    P1, P2 = C.shape
    log_mu = math.log(1.0 / P1 + 1e-8)
    log_nu = math.log(1.0 / P2 + 1e-8)

    def M(u, v):
        return (-C + u[:, None] + v[None, :]) / eps

    n_chunks = -(-int(max_iter) // chunk)

    def cond(c):
        it, _, _, err = c
        return jnp.logical_and(it < n_chunks, err >= thresh)

    def body(c):
        it, u, v, _ = c

        def step(_, s):
            u, v, _ = s
            u1 = u
            u = eps * (log_mu - jax.scipy.special.logsumexp(M(u, v), axis=-1)) + u
            v = eps * (log_nu - jax.scipy.special.logsumexp(M(u, v), axis=-2)) + v
            return (u, v, u1)

        u, v, u1 = lax.fori_loop(0, chunk, step, (u, v, u))
        err = jnp.sum(jnp.abs(u - u1))
        return (it + 1, u, v, err)

    u0 = jnp.zeros((P1,), jnp.float32)
    v0 = jnp.zeros((P2,), jnp.float32)
    _, u, v, _ = lax.while_loop(
        cond, body,
        (jnp.array(0, jnp.int32), u0, v0, jnp.array(jnp.inf, jnp.float32)))
    pi = jnp.exp(M(u, v))
    cost = jnp.sum(pi * C)
    return cost, pi, C


def _reference(x, y, eps, max_iter, thresh=0.1, chunk=5):
    outs = [_reference_single(x[b], y[b], eps, max_iter, thresh, chunk)
            for b in range(x.shape[0])]
    return (jnp.stack([o[0] for o in outs]),
            jnp.stack([o[1] for o in outs]),
            jnp.stack([o[2] for o in outs]))


if __name__ == "__main__":
    key = jax.random.PRNGKey(0)
    kx, ky = jax.random.split(key)
    # P1 = 8 fills the sublanes, P2 = 128 fills the lanes -> all (P1, P2)
    # intermediates and the pi/C output stores are lane-dense.
    N, P1, P2, D = 2, 8, 128, 32
    x = jax.random.normal(kx, (N, P1, D), dtype=jnp.float32)
    y = jax.random.normal(ky, (N, P2, D), dtype=jnp.float32)

    eps, max_iter, err_every = 0.1, 50, 5
    cost, pi, C = sinkhorn_distance(x, y, eps=eps, max_iter=max_iter,
                                    err_check_every=err_every)
    jax.block_until_ready((cost, pi, C))

    cost_r, pi_r, C_r = _reference(x, y, eps, max_iter, thresh=0.1, chunk=err_every)
    # Exact (loop-independent) cost matrix check against the PyTorch formula.
    d = x[:, :, None, :] - y[:, None, :, :]
    C_exact = jnp.sum(d * d, axis=-1)

    assert jnp.all(jnp.isfinite(cost)) and jnp.all(jnp.isfinite(pi))
    assert jnp.allclose(C, C_exact, rtol=1e-4, atol=1e-3)
    assert jnp.allclose(C, C_r, rtol=1e-4, atol=1e-3)
    assert jnp.allclose(pi, pi_r, rtol=1e-3, atol=1e-5)
    assert jnp.allclose(cost, cost_r, rtol=1e-3, atol=1e-4)
    print("KERNEL_OK")
</pallas_src>

<mosaic_0001>
module attributes {stable_mosaic.version = 11 : i64} {
  func.func @_sinkhorn_kernel(%arg0: i32, %arg1: memref<1x8x32xf32, #tpu.memory_space<vmem>>, %arg2: memref<1x128x32xf32, #tpu.memory_space<vmem>>, %arg3: memref<1x1x128xf32, #tpu.memory_space<vmem>>, %arg4: memref<1x8x128xf32, #tpu.memory_space<vmem>>, %arg5: memref<1x8x128xf32, #tpu.memory_space<vmem>>) attributes {dimension_semantics = [#tpu.dimension_semantics<parallel>], iteration_bounds = array<i64: 2>, scalar_prefetch = 0 : i64, scratch_operands = 0 : i64, tpu.core_type = #tpu.core_type<tc>, window_params = [{transform_indices = @transform_0, window_bounds = array<i64: 1, 8, 32>}, {transform_indices = @transform_1, window_bounds = array<i64: 1, 128, 32>}, {transform_indices = @transform_2, window_bounds = array<i64: 1, 1, 128>}, {transform_indices = @transform_3, window_bounds = array<i64: 1, 8, 128>}, {transform_indices = @transform_4, window_bounds = array<i64: 1, 8, 128>}]} {
    %c0 = arith.constant 0 : index
    %c0_0 = arith.constant 0 : index
    %c0_1 = arith.constant 0 : index
    %0 = vector.load %arg1[%c0, %c0_0, %c0_1] : memref<1x8x32xf32, #tpu.memory_space<vmem>>, vector<1x8x32xf32>
    %1 = vector.shape_cast %0 : vector<1x8x32xf32> to vector<8x32xf32>
    %c0_2 = arith.constant 0 : index
    %c0_3 = arith.constant 0 : index
    %c0_4 = arith.constant 0 : index
    %2 = vector.load %arg2[%c0_2, %c0_3, %c0_4] : memref<1x128x32xf32, #tpu.memory_space<vmem>>, vector<1x128x32xf32>
    %3 = vector.shape_cast %2 : vector<1x128x32xf32> to vector<128x32xf32>
    %4 = tpu.transpose %3, [1, 0] : vector<128x32xf32> -> vector<32x128xf32>
    %cst = arith.constant dense<0.000000e+00> : vector<8x128xf32>
    %5 = tpu.matmul %1, %4, %cst {dimension_numbers = #tpu.dot_dimension_numbers<[1], [0], [0], [1], [0, 0, 1, 1], [], []>} : vector<8x32xf32>, vector<32x128xf32>, vector<8x128xf32> -> vector<8x128xf32>
    %6 = arith.mulf %1, %1 : vector<8x32xf32>
    %cst_5 = arith.constant dense<0.000000e+00> : vector<8xf32>
    %7 = vector.multi_reduction <add>, %6, %cst_5 [1] : vector<8x32xf32> to vector<8xf32>
    %8 = vector.shape_cast %7 : vector<8xf32> to vector<8x1xf32>
    %9 = arith.mulf %4, %4 : vector<32x128xf32>
    %cst_6 = arith.constant dense<0.000000e+00> : vector<128xf32>
    %10 = vector.multi_reduction <add>, %9, %cst_6 [0] : vector<32x128xf32> to vector<128xf32>
    %11 = vector.shape_cast %10 : vector<128xf32> to vector<1x128xf32>
    %12 = vector.broadcast %8 : vector<8x1xf32> to vector<8x128xf32>
    %13 = vector.broadcast %11 : vector<1x128xf32> to vector<8x128xf32>
    %14 = arith.addf %12, %13 : vector<8x128xf32>
    %cst_7 = arith.constant 2.000000e+00 : f32
    %15 = vector.broadcast %cst_7 : f32 to vector<8x128xf32>
    %16 = arith.mulf %15, %5 : vector<8x128xf32>
    %17 = arith.subf %14, %16 : vector<8x128xf32>
    %cst_8 = arith.constant 0.000000e+00 : f32
    %18 = vector.broadcast %cst_8 : f32 to vector<8x128xf32>
    %19 = arith.maximumf %17, %18 : vector<8x128xf32>
    %c0_9 = arith.constant 0 : index
    %c0_10 = arith.constant 0 : index
    %c0_11 = arith.constant 0 : index
    %20 = vector.load %arg5[%c0_9, %c0_10, %c0_11] : memref<1x8x128xf32, #tpu.memory_space<vmem>>, vector<1x8x128xf32>
    %21 = vector.shape_cast %20 : vector<1x8x128xf32> to vector<8x128xf32>
    %22 = vector.shape_cast %19 : vector<8x128xf32> to vector<1x8x128xf32>
    tpu.vector_store %arg5[%c0_9, %c0_10, %c0_11], %22 {strides = array<i32>} : memref<1x8x128xf32, #tpu.memory_space<vmem>>, vector<1x8x128xf32>,
    %cst_12 = arith.constant -1.000000e+01 : f32
    %23 = vector.broadcast %cst_12 : f32 to vector<8x128xf32>
    %24 = arith.mulf %19, %23 : vector<8x128xf32>
    %cst_13 = arith.constant 0.000000e+00 : f32
    %25 = vector.broadcast %cst_13 : f32 to vector<8x1xf32>
    %cst_14 = arith.constant 0.000000e+00 : f32
    %26 = vector.broadcast %cst_14 : f32 to vector<1x128xf32>
    %c0_i32 = arith.constant 0 : i32
    %cst_15 = arith.constant 0x7F800000 : f32
    %27:4 = scf.while (%arg6 = %c0_i32, %arg7 = %25, %arg8 = %26, %arg9 = %cst_15) : (i32, vector<8x1xf32>, vector<1x128xf32>, f32) -> (i32, vector<8x1xf32>, vector<1x128xf32>, f32) {
      %c10_i32 = arith.constant 10 : i32
      %47 = arith.cmpi slt, %arg6, %c10_i32 : i32
      %cst_26 = arith.constant 1.000000e-01 : f32
      %48 = arith.cmpf oge, %arg9, %cst_26 : f32
      %49 = arith.andi %47, %48 : i1
      scf.condition(%49) %arg6, %arg7, %arg8, %arg9 : i32, vector<8x1xf32>, vector<1x128xf32>, f32
    } do {
    ^bb0(%arg6: i32, %arg7: vector<8x1xf32>, %arg8: vector<1x128xf32>, %arg9: f32):
      %c0_i32_26 = arith.constant 0 : i32
      %47 = vector.broadcast %arg7 : vector<8x1xf32> to vector<8x128xf32>
      %48 = arith.addf %24, %47 : vector<8x128xf32>
      %49 = vector.broadcast %arg8 : vector<1x128xf32> to vector<8x128xf32>
      %50 = arith.addf %48, %49 : vector<8x128xf32>
      %cst_27 = arith.constant dense<0xFF800000> : vector<8xf32>
      %51 = vector.multi_reduction <maximumf>, %50, %cst_27 [1] : vector<8x128xf32> to vector<8xf32>
      %52 = vector.shape_cast %51 : vector<8xf32> to vector<8x1xf32>
      %53 = vector.broadcast %52 : vector<8x1xf32> to vector<8x128xf32>
      %54 = arith.subf %50, %53 : vector<8x128xf32>
      %55 = math.exp %54 : vector<8x128xf32>
      %cst_28 = arith.constant dense<0.000000e+00> : vector<8xf32>
      %56 = vector.multi_reduction <add>, %55, %cst_28 [1] : vector<8x128xf32> to vector<8xf32>
      %57 = vector.shape_cast %56 : vector<8xf32> to vector<8x1xf32>
      %58 = math.log %57 : vector<8x1xf32>
      %59 = arith.addf %52, %58 : vector<8x1xf32>
      %cst_29 = arith.constant -2.07944155 : f32
      %60 = vector.broadcast %cst_29 : f32 to vector<8x1xf32>
      %61 = arith.subf %60, %59 : vector<8x1xf32>
      %62 = arith.addf %61, %arg7 : vector<8x1xf32>
      %63 = vector.broadcast %62 : vector<8x1xf32> to vector<8x128xf32>
      %64 = arith.addf %24, %63 : vector<8x128xf32>
      %65 = vector.broadcast %arg8 : vector<1x128xf32> to vector<8x128xf32>
      %66 = arith.addf %64, %65 : vector<8x128xf32>
      %cst_30 = arith.constant dense<0xFF800000> : vector<128xf32>
      %67 = vector.multi_reduction <maximumf>, %66, %cst_30 [0] : vector<8x128xf32> to vector<128xf32>
      %68 = vector.shape_cast %67 : vector<128xf32> to vector<1x128xf32>
      %69 = vector.broadcast %68 : vector<1x128xf32> to vector<8x128xf32>
      %70 = arith.subf %66, %69 : vector<8x128xf32>
      %71 = math.exp %70 : vector<8x128xf32>
      %cst_31 = arith.constant dense<0.000000e+00> : vector<128xf32>
      %72 = vector.multi_reduction <add>, %71, %cst_31 [0] : vector<8x128xf32> to vector<128xf32>
      %73 = vector.shape_cast %72 : vector<128xf32> to vector<1x128xf32>
      %74 = math.log %73 : vector<1x128xf32>
      %75 = arith.addf %68, %74 : vector<1x128xf32>
      %cst_32 = arith.constant -4.85202885 : f32
      %76 = vector.broadcast %cst_32 : f32 to vector<1x128xf32>
      %77 = arith.subf %76, %75 : vector<1x128xf32>
      %78 = arith.addf %77, %arg8 : vector<1x128xf32>
      %c1_i32 = arith.constant 1 : i32
      %79 = vector.broadcast %62 : vector<8x1xf32> to vector<8x128xf32>
      %80 = arith.addf %24, %79 : vector<8x128xf32>
      %81 = vector.broadcast %78 : vector<1x128xf32> to vector<8x128xf32>
      %82 = arith.addf %80, %81 : vector<8x128xf32>
      %cst_33 = arith.constant dense<0xFF800000> : vector<8xf32>
      %83 = vector.multi_reduction <maximumf>, %82, %cst_33 [1] : vector<8x128xf32> to vector<8xf32>
      %84 = vector.shape_cast %83 : vector<8xf32> to vector<8x1xf32>
      %85 = vector.broadcast %84 : vector<8x1xf32> to vector<8x128xf32>
      %86 = arith.subf %82, %85 : vector<8x128xf32>
      %87 = math.exp %86 : vector<8x128xf32>
      %cst_34 = arith.constant dense<0.000000e+00> : vector<8xf32>
      %88 = vector.multi_reduction <add>, %87, %cst_34 [1] : vector<8x128xf32> to vector<8xf32>
      %89 = vector.shape_cast %88 : vector<8xf32> to vector<8x1xf32>
      %90 = math.log %89 : vector<8x1xf32>
      %91 = arith.addf %84, %90 : vector<8x1xf32>
      %cst_35 = arith.constant -2.07944155 : f32
      %92 = vector.broadcast %cst_35 : f32 to vector<8x1xf32>
      %93 = arith.subf %92, %91 : vector<8x1xf32>
      %94 = arith.addf %93, %62 : vector<8x1xf32>
      %95 = vector.broadcast %94 : vector<8x1xf32> to vector<8x128xf32>
      %96 = arith.addf %24, %95 : vector<8x128xf32>
      %97 = vector.broadcast %78 : vector<1x128xf32> to vector<8x128xf32>
      %98 = arith.addf %96, %97 : vector<8x128xf32>
      %cst_36 = arith.constant dense<0xFF800000> : vector<128xf32>
      %99 = vector.multi_reduction <maximumf>, %98, %cst_36 [0] : vector<8x128xf32> to vector<128xf32>
      %100 = vector.shape_cast %99 : vector<128xf32> to vector<1x128xf32>
      %101 = vector.broadcast %100 : vector<1x128xf32> to vector<8x128xf32>
      %102 = arith.subf %98, %101 : vector<8x128xf32>
      %103 = math.exp %102 : vector<8x128xf32>
      %cst_37 = arith.constant dense<0.000000e+00> : vector<128xf32>
      %104 = vector.multi_reduction <add>, %103, %cst_37 [0] : vector<8x128xf32> to vector<128xf32>
      %105 = vector.shape_cast %104 : vector<128xf32> to vector<1x128xf32>
      %106 = math.log %105 : vector<1x128xf32>
      %107 = arith.addf %100, %106 : vector<1x128xf32>
      %cst_38 = arith.constant -4.85202885 : f32
      %108 = vector.broadcast %cst_38 : f32 to vector<1x128xf32>
      %109 = arith.subf %108, %107 : vector<1x128xf32>
      %110 = arith.addf %109, %78 : vector<1x128xf32>
      %c2_i32 = arith.constant 2 : i32
      %111 = vector.broadcast %94 : vector<8x1xf32> to vector<8x128xf32>
      %112 = arith.addf %24, %111 : vector<8x128xf32>
      %113 = vector.broadcast %110 : vector<1x128xf32> to vector<8x128xf32>
      %114 = arith.addf %112, %113 : vector<8x128xf32>
      %cst_39 = arith.constant dense<0xFF800000> : vector<8xf32>
      %115 = vector.multi_reduction <maximumf>, %114, %cst_39 [1] : vector<8x128xf32> to vector<8xf32>
      %116 = vector.shape_cast %115 : vector<8xf32> to vector<8x1xf32>
      %117 = vector.broadcast %116 : vector<8x1xf32> to vector<8x128xf32>
      %118 = arith.subf %114, %117 : vector<8x128xf32>
      %119 = math.exp %118 : vector<8x128xf32>
      %cst_40 = arith.constant dense<0.000000e+00> : vector<8xf32>
      %120 = vector.multi_reduction <add>, %119, %cst_40 [1] : vector<8x128xf32> to vector<8xf32>
      %121 = vector.shape_cast %120 : vector<8xf32> to vector<8x1xf32>
      %122 = math.log %121 : vector<8x1xf32>
      %123 = arith.addf %116, %122 : vector<8x1xf32>
      %cst_41 = arith.constant -2.07944155 : f32
      %124 = vector.broadcast %cst_41 : f32 to vector<8x1xf32>
      %125 = arith.subf %124, %123 : vector<8x1xf32>
      %126 = arith.addf %125, %94 : vector<8x1xf32>
      %127 = vector.broadcast %126 : vector<8x1xf32> to vector<8x128xf32>
      %128 = arith.addf %24, %127 : vector<8x128xf32>
      %129 = vector.broadcast %110 : vector<1x128xf32> to vector<8x128xf32>
      %130 = arith.addf %128, %129 : vector<8x128xf32>
      %cst_42 = arith.constant dense<0xFF800000> : vector<128xf32>
      %131 = vector.multi_reduction <maximumf>, %130, %cst_42 [0] : vector<8x128xf32> to vector<128xf32>
      %132 = vector.shape_cast %131 : vector<128xf32> to vector<1x128xf32>
      %133 = vector.broadcast %132 : vector<1x128xf32> to vector<8x128xf32>
      %134 = arith.subf %130, %133 : vector<8x128xf32>
      %135 = math.exp %134 : vector<8x128xf32>
      %cst_43 = arith.constant dense<0.000000e+00> : vector<128xf32>
      %136 = vector.multi_reduction <add>, %135, %cst_43 [0] : vector<8x128xf32> to vector<128xf32>
      %137 = vector.shape_cast %136 : vector<128xf32> to vector<1x128xf32>
      %138 = math.log %137 : vector<1x128xf32>
      %139 = arith.addf %132, %138 : vector<1x128xf32>
      %cst_44 = arith.constant -4.85202885 : f32
      %140 = vector.broadcast %cst_44 : f32 to vector<1x128xf32>
      %141 = arith.subf %140, %139 : vector<1x128xf32>
      %142 = arith.addf %141, %110 : vector<1x128xf32>
      %c3_i32 = arith.constant 3 : i32
      %143 = vector.broadcast %126 : vector<8x1xf32> to vector<8x128xf32>
      %144 = arith.addf %24, %143 : vector<8x128xf32>
      %145 = vector.broadcast %142 : vector<1x128xf32> to vector<8x128xf32>
      %146 = arith.addf %144, %145 : vector<8x128xf32>
      %cst_45 = arith.constant dense<0xFF800000> : vector<8xf32>
      %147 = vector.multi_reduction <maximumf>, %146, %cst_45 [1] : vector<8x128xf32> to vector<8xf32>
      %148 = vector.shape_cast %147 : vector<8xf32> to vector<8x1xf32>
      %149 = vector.broadcast %148 : vector<8x1xf32> to vector<8x128xf32>
      %150 = arith.subf %146, %149 : vector<8x128xf32>
      %151 = math.exp %150 : vector<8x128xf32>
      %cst_46 = arith.constant dense<0.000000e+00> : vector<8xf32>
      %152 = vector.multi_reduction <add>, %151, %cst_46 [1] : vector<8x128xf32> to vector<8xf32>
      %153 = vector.shape_cast %152 : vector<8xf32> to vector<8x1xf32>
      %154 = math.log %153 : vector<8x1xf32>
      %155 = arith.addf %148, %154 : vector<8x1xf32>
      %cst_47 = arith.constant -2.07944155 : f32
      %156 = vector.broadcast %cst_47 : f32 to vector<8x1xf32>
      %157 = arith.subf %156, %155 : vector<8x1xf32>
      %158 = arith.addf %157, %126 : vector<8x1xf32>
      %159 = vector.broadcast %158 : vector<8x1xf32> to vector<8x128xf32>
      %160 = arith.addf %24, %159 : vector<8x128xf32>
      %161 = vector.broadcast %142 : vector<1x128xf32> to vector<8x128xf32>
      %162 = arith.addf %160, %161 : vector<8x128xf32>
      %cst_48 = arith.constant dense<0xFF800000> : vector<128xf32>
      %163 = vector.multi_reduction <maximumf>, %162, %cst_48 [0] : vector<8x128xf32> to vector<128xf32>
      %164 = vector.shape_cast %163 : vector<128xf32> to vector<1x128xf32>
      %165 = vector.broadcast %164 : vector<1x128xf32> to vector<8x128xf32>
      %166 = arith.subf %162, %165 : vector<8x128xf32>
      %167 = math.exp %166 : vector<8x128xf32>
      %cst_49 = arith.constant dense<0.000000e+00> : vector<128xf32>
      %168 = vector.multi_reduction <add>, %167, %cst_49 [0] : vector<8x128xf32> to vector<128xf32>
      %169 = vector.shape_cast %168 : vector<128xf32> to vector<1x128xf32>
      %170 = math.log %169 : vector<1x128xf32>
      %171 = arith.addf %164, %170 : vector<1x128xf32>
      %cst_50 = arith.constant -4.85202885 : f32
      %172 = vector.broadcast %cst_50 : f32 to vector<1x128xf32>
      %173 = arith.subf %172, %171 : vector<1x128xf32>
      %174 = arith.addf %173, %142 : vector<1x128xf32>
      %c4_i32 = arith.constant 4 : i32
      %175 = vector.broadcast %158 : vector<8x1xf32> to vector<8x128xf32>
      %176 = arith.addf %24, %175 : vector<8x128xf32>
      %177 = vector.broadcast %174 : vector<1x128xf32> to vector<8x128xf32>
      %178 = arith.addf %176, %177 : vector<8x128xf32>
      %cst_51 = arith.constant dense<0xFF800000> : vector<8xf32>
      %179 = vector.multi_reduction <maximumf>, %178, %cst_51 [1] : vector<8x128xf32> to vector<8xf32>
      %180 = vector.shape_cast %179 : vector<8xf32> to vector<8x1xf32>
      %181 = vector.broadcast %180 : vector<8x1xf32> to vector<8x128xf32>
      %182 = arith.subf %178, %181 : vector<8x128xf32>
      %183 = math.exp %182 : vector<8x128xf32>
      %cst_52 = arith.constant dense<0.000000e+00> : vector<8xf32>
      %184 = vector.multi_reduction <add>, %183, %cst_52 [1] : vector<8x128xf32> to vector<8xf32>
      %185 = vector.shape_cast %184 : vector<8xf32> to vector<8x1xf32>
      %186 = math.log %185 : vector<8x1xf32>
      %187 = arith.addf %180, %186 : vector<8x1xf32>
      %cst_53 = arith.constant -2.07944155 : f32
      %188 = vector.broadcast %cst_53 : f32 to vector<8x1xf32>
      %189 = arith.subf %188, %187 : vector<8x1xf32>
      %190 = arith.addf %189, %158 : vector<8x1xf32>
      %191 = vector.broadcast %190 : vector<8x1xf32> to vector<8x128xf32>
      %192 = arith.addf %24, %191 : vector<8x128xf32>
      %193 = vector.broadcast %174 : vector<1x128xf32> to vector<8x128xf32>
      %194 = arith.addf %192, %193 : vector<8x128xf32>
      %cst_54 = arith.constant dense<0xFF800000> : vector<128xf32>
      %195 = vector.multi_reduction <maximumf>, %194, %cst_54 [0] : vector<8x128xf32> to vector<128xf32>
      %196 = vector.shape_cast %195 : vector<128xf32> to vector<1x128xf32>
      %197 = vector.broadcast %196 : vector<1x128xf32> to vector<8x128xf32>
      %198 = arith.subf %194, %197 : vector<8x128xf32>
      %199 = math.exp %198 : vector<8x128xf32>
      %cst_55 = arith.constant dense<0.000000e+00> : vector<128xf32>
      %200 = vector.multi_reduction <add>, %199, %cst_55 [0] : vector<8x128xf32> to vector<128xf32>
      %201 = vector.shape_cast %200 : vector<128xf32> to vector<1x128xf32>
      %202 = math.log %201 : vector<1x128xf32>
      %203 = arith.addf %196, %202 : vector<1x128xf32>
      %cst_56 = arith.constant -4.85202885 : f32
      %204 = vector.broadcast %cst_56 : f32 to vector<1x128xf32>
      %205 = arith.subf %204, %203 : vector<1x128xf32>
      %206 = arith.addf %205, %174 : vector<1x128xf32>
      %c5_i32 = arith.constant 5 : i32
      %207 = arith.subf %190, %158 : vector<8x1xf32>
      %208 = math.absf %207 : vector<8x1xf32>
      %209 = vector.shape_cast %208 : vector<8x1xf32> to vector<1x8x1xf32>
      %cst_57 = arith.constant dense<0.000000e+00> : vector<1xf32>
      %210 = vector.multi_reduction <add>, %209, %cst_57 [1, 2] : vector<1x8x1xf32> to vector<1xf32>
      %211 = vector.shape_cast %210 : vector<1xf32> to vector<1x1x1xf32>
      %212 = vector.extract %211[0, 0, 0] : f32 from vector<1x1x1xf32>
      %cst_58 = arith.constant 1.000000e-01 : f32
      %213 = arith.mulf %cst_58, %212 : f32
      %c1_i32_59 = arith.constant 1 : i32
      %214 = arith.addi %arg6, %c1_i32_59 : i32
      scf.yield %214, %190, %206, %213 : i32, vector<8x1xf32>, vector<1x128xf32>, f32
    }
    %28 = vector.broadcast %27#1 : vector<8x1xf32> to vector<8x128xf32>
    %29 = arith.addf %24, %28 : vector<8x128xf32>
    %30 = vector.broadcast %27#2 : vector<1x128xf32> to vector<8x128xf32>
    %31 = arith.addf %29, %30 : vector<8x128xf32>
    %32 = math.exp %31 : vector<8x128xf32>
    %c0_16 = arith.constant 0 : index
    %c0_17 = arith.constant 0 : index
    %c0_18 = arith.constant 0 : index
    %33 = vector.load %arg4[%c0_16, %c0_17, %c0_18] : memref<1x8x128xf32, #tpu.memory_space<vmem>>, vector<1x8x128xf32>
    %34 = vector.shape_cast %33 : vector<1x8x128xf32> to vector<8x128xf32>
    %35 = vector.shape_cast %32 : vector<8x128xf32> to vector<1x8x128xf32>
    tpu.vector_store %arg4[%c0_16, %c0_17, %c0_18], %35 {strides = array<i32>} : memref<1x8x128xf32, #tpu.memory_space<vmem>>, vector<1x8x128xf32>,
    %c0_19 = arith.constant 0 : index
    %c0_20 = arith.constant 0 : index
    %c0_21 = arith.constant 0 : index
    %36 = vector.load %arg5[%c0_19, %c0_20, %c0_21] : memref<1x8x128xf32, #tpu.memory_space<vmem>>, vector<1x8x128xf32>
    %37 = vector.shape_cast %36 : vector<1x8x128xf32> to vector<8x128xf32>
    %38 = arith.mulf %32, %37 : vector<8x128xf32>
    %39 = vector.shape_cast %38 : vector<8x128xf32> to vector<1x8x128xf32>
    %cst_22 = arith.constant dense<0.000000e+00> : vector<1xf32>
    %40 = vector.multi_reduction <add>, %39, %cst_22 [1, 2] : vector<1x8x128xf32> to vector<1xf32>
    %41 = vector.shape_cast %40 : vector<1xf32> to vector<1x1x1xf32>
    %42 = vector.extract %41[0, 0, 0] : f32 from vector<1x1x1xf32>
    %43 = vector.broadcast %42 : f32 to vector<1x128xf32>
    %c0_23 = arith.constant 0 : index
    %c0_24 = arith.constant 0 : index
    %c0_25 = arith.constant 0 : index
    %44 = vector.load %arg3[%c0_23, %c0_24, %c0_25] : memref<1x1x128xf32, #tpu.memory_space<vmem>>, vector<1x1x128xf32>
    %45 = vector.shape_cast %44 : vector<1x1x128xf32> to vector<1x128xf32>
    %46 = vector.shape_cast %43 : vector<1x128xf32> to vector<1x1x128xf32>
    tpu.vector_store %arg3[%c0_23, %c0_24, %c0_25], %46 {strides = array<i32>} : memref<1x1x128xf32, #tpu.memory_space<vmem>>, vector<1x1x128xf32>,
    return
  }
  func.func @transform_0(%arg0: i32) -> (i32, i32, i32) {
    %c0_i32 = arith.constant 0 : i32
    %c0_i32_0 = arith.constant 0 : i32
    %c0_i32_1 = arith.constant 0 : i32
    return %arg0, %c0_i32, %c0_i32_0 : i32, i32, i32
  }
  func.func @transform_1(%arg0: i32) -> (i32, i32, i32) {
    %c0_i32 = arith.constant 0 : i32
    %c0_i32_0 = arith.constant 0 : i32
    %c0_i32_1 = arith.constant 0 : i32
    return %arg0, %c0_i32, %c0_i32_0 : i32, i32, i32
  }
  func.func @transform_2(%arg0: i32) -> (i32, i32, i32) {
    %c0_i32 = arith.constant 0 : i32
    %c0_i32_0 = arith.constant 0 : i32
    %c0_i32_1 = arith.constant 0 : i32
    return %arg0, %c0_i32, %c0_i32_0 : i32, i32, i32
  }
  func.func @transform_3(%arg0: i32) -> (i32, i32, i32) {
    %c0_i32 = arith.constant 0 : i32
    %c0_i32_0 = arith.constant 0 : i32
    %c0_i32_1 = arith.constant 0 : i32
    return %arg0, %c0_i32, %c0_i32_0 : i32, i32, i32
  }
  func.func @transform_4(%arg0: i32) -> (i32, i32, i32) {
    %c0_i32 = arith.constant 0 : i32
    %c0_i32_0 = arith.constant 0 : i32
    %c0_i32_1 = arith.constant 0 : i32
    return %arg0, %c0_i32, %c0_i32_0 : i32, i32, i32
  }
}

</mosaic_0001>

<bundles_post_ra>
// kernel: tpu_custom_call.1
= control target key start
LH: loop header
LB: loop body
LE: loop exit
PB: predicated region body
PF: predicated region fallthrough
CT: control target
= control target key end

     0   :  { %10 = vsyncpa [#allocation3], 0  ;;  %s1357_s0 = inlined_call_operand.vmem [shape: f32[2,8,32], index: 0, kind: input, shape index: {}]   ;;  %s1358_s1 = inlined_call_operand.vmem [shape: f32[2,128,32], index: 1, kind: input, shape index: {}]   ;;  %s1359_s2 = inlined_call_operand.hbm [shape: f32[2,1,128], index: 2, kind: output, shape index: {0}]   ;;  %s1360_s3 = inlined_call_operand.hbm [shape: f32[2,8,128], index: 3, kind: output, shape index: {1}]   ;;  %s1361_s4 = inlined_call_operand.hbm [shape: f32[2,8,128], index: 4, kind: output, shape index: {2}]  }
   0x1   :  { %12 = vsyncpa [#allocation3 + $0x1], 0 }
   0x2   :  { %13 = vsyncpa [#allocation5], 0 }
   0x3   :  { %15 = vsyncpa [#allocation5 + $0x1], 0  ;;  %s1128_s15 = smov 0   ;;  %s1130_s16 = smov 0  }
   0x4   :  { %s1132_s17 = smov 0   ;;  %s1134_s18 = smov 0  }
   0x5 LB: > { %s1149_s19 = sadd.s32 4294967295, %s1083_s18   ;;  %s787_s20 = sadd.s32 4294967294, %s1083_s18   ;;  %s1083_s18 = sphi %s1134_s18, %s1368_s18   ;;  %s1079_s17 = sphi %s1132_s17, %s1367_s17   ;;  %s1075_s16 = sphi %s1130_s16, %s1366_s16   ;;  %s1071_s15 = sphi %s1128_s15, %s1365_s15  }
   0x6   : > { %s1153_s21 = sadd.s32 1, %s1083_s18   ;;  %s80_s22 = sadd.s32 1, %s1079_s17 }
   0x7   : > { %s77_s23 = ssub.s32 %s1083_s18, %s1153_s21  ;;  %p90_p0 = scmp.ne.s32.totalorder %s1079_s17, %s1075_s16 }
   0x8   : > { %p78_p1 = scmp.eq.s32.totalorder %s77_s23, 0  ;;  %p91_p2 = scmp.eq.s32.totalorder %s1149_s19, 1 }
   0x9   : > { %p96_p3 = scmp.ne.s32.totalorder %s1075_s16, %s1071_s15  ;;  %p97_p4 = scmp.eq.s32.totalorder %s787_s20, 1 }
   0xa   : > { %s1166_s24 = scalar_select %p78_p1, %s1079_s17, %s80_s22  }
   0xb   : > { %p1168_p5 = por %p91_p2, %p90_p0  ;;  %p1172_p6 = por %p97_p4, %p96_p3 }
   0xc   : > { %p790_p7 = scmp.ge.s32.totalorder %s1083_s18, 1  ;;  %p182_p8 = scmp.lt.s32.totalorder %s1083_s18, 3 }
   0xe   : > { %p183_p9 = pnand %p790_p7, %p182_p8 }
   0xf   : > { %p221_p10 = scmp.lt.s32.totalorder (!%p183_p9), %s1149_s19, 1  ;;  %vm279_vm0 = vcmask (!%p183_p9), 261120   ;;  %v1097_v6 = vmov (!%p183_p9), 0.0|0.0   ;;  %vm1098_vm1 = vmmov (!%p183_p9), 0   ;;  %v1099_v10 = vmov (!%p183_p9), 0.0   ;;  %s1199_s10 = sand.u32 (!%p183_p9), 1, %s1075_s16  }
  0x10   : > { %186 = sbr.rel (%p183_p9) target bundleno = 2694 (0xa86), region = 28  ;;  %821 = vmatprep.subr.bf16.mxu0 (!%p183_p9), %v1097_v6  ;;  %818 = vmatprep.mubr.msk.f32.mxu0 (!%p183_p9), %vm1098_vm1, %v1099_v10  ;;  %s791_s11 = sshll.u32 (!%p183_p9), %s1199_s10, 3  ;;  %v1222_v48 = vmov (!%p183_p9), 0.0   ;;  %v1224_v49 = vmov (!%p183_p9), 0.0  }
  0x11   : > { %s1212_s12 = scalar_lea.vmem (!%p183_p9), [#allocation6], %s791_s11  ;;  %s206_s13 = scalar_lea.vmem (!%p183_p9), [#allocation2], %s1199_s10 }
  0x12   : > { %s1220_s14 = scalar_lea.vmem (!%p183_p9), [#allocation4], %s791_s11  ;;  %s1226_s22 = smov (!%p183_p9), 0  }
  0x17   : > { %s222_s27 = scalar_select %p221_p10, %s1149_s19, 1 }
  0x19   : > { %s804_s28 = sshll.u32 %s222_s27, 7  ;;  %s793_s29 = sshll.u32 %s222_s27, 3 }
  0x1a   : > { %s1183_s6 = scalar_lea.vmem %s1358_s1, %s804_s28  ;;  %s224_s9 = scalar_lea.vmem %s1357_s0, %s793_s29 }
  0x1b   : > { %v231_v0 = vld [vmem:[%s1183_s6] sm:$0xff]  ;;  %v232_v2 = vld [vmem:[%s1183_s6 + $0x8] sm:$0xff]  ;;  %v233_v5 = vld [vmem:[%s1183_s6 + $0x10] sm:$0xff] }
  0x1c   : > { %247 = vxpose.xlu0.b32.start [1/16] (narrow) %v231_v0, 32  ;;  %v230_v1 = vld [vmem:[%s224_s9] sm:$0xff]  ;;  %v234_v7 = vld [vmem:[%s1183_s6 + $0x18] sm:$0xff]  ;;  %v236_v9 = vld [vmem:[%s1183_s6 + $0x28] sm:$0xff] }
  0x1d   : > { %v353_v3 = vmul.f32 %v230_v1, %v230_v1  ;;  %v235_v8 = vld [vmem:[%s1183_s6 + $0x20] sm:$0xff]  ;;  %v237_v11 = vld [vmem:[%s1183_s6 + $0x30] sm:$0xff]  ;;  %v238_v12 = vld [vmem:[%s1183_s6 + $0x38] sm:$0xff] }
  0x1e   : > { %v239_v13 = vld [vmem:[%s1183_s6 + $0x40] sm:$0xff]  ;;  %v240_v14 = vld [vmem:[%s1183_s6 + $0x48] sm:$0xff]  ;;  %v241_v15 = vld [vmem:[%s1183_s6 + $0x50] sm:$0xff] }
  0x1f   : > { %v354_v4 = vsel %vm279_vm0, %v353_v3, 0.0  ;;  %v242_v16 = vld [vmem:[%s1183_s6 + $0x58] sm:$0xff]  ;;  %v243_v17 = vld [vmem:[%s1183_s6 + $0x60] sm:$0xff]  ;;  %v244_v18 = vld [vmem:[%s1183_s6 + $0x68] sm:$0xff] }
  0x20   : > { %248 = vxpose.xlu0.b32.cont [2/16] (narrow) %v232_v2, 32  ;;  %355 = vadd.xlane.f32.xlu1 %v354_v4  ;;  %v245_v19 = vld [vmem:[%s1183_s6 + $0x70] sm:$0xff]  ;;  %v246_v20 = vld [vmem:[%s1183_s6 + $0x78] sm:$0xff] }
  0x24   : > { %249 = vxpose.xlu0.b32.cont [3/16] (narrow) %v233_v5, 32 }
  0x28   : > { %250 = vxpose.xlu0.b32.cont [4/16] (narrow) %v234_v7, 32 }
  0x2c   : > { %251 = vxpose.xlu0.b32.cont [5/16] (narrow) %v235_v8, 32 }
  0x30   : > { %252 = vxpose.xlu0.b32.cont [6/16] (narrow) %v236_v9, 32 }
  0x34   : > { %253 = vxpose.xlu0.b32.cont [7/16] (narrow) %v237_v11, 32 }
  0x38   : > { %254 = vxpose.xlu0.b32.cont [8/16] (narrow) %v238_v12, 32 }
  0x3c   : > { %255 = vxpose.xlu0.b32.cont [9/16] (narrow) %v239_v13, 32 }
  0x40   : > { %256 = vxpose.xlu0.b32.cont [10/16] (narrow) %v240_v14, 32 }
  0x44   : > { %257 = vxpose.xlu0.b32.cont [11/16] (narrow) %v241_v15, 32 }
  0x48   : > { %258 = vxpose.xlu0.b32.cont [12/16] (narrow) %v242_v16, 32 }
  0x4c   : > { %259 = vxpose.xlu0.b32.cont [13/16] (narrow) %v243_v17, 32 }
  0x50   : > { %260 = vxpose.xlu0.b32.cont [14/16] (narrow) %v244_v18, 32 }
  0x54   : > { %261 = vxpose.xlu0.b32.cont [15/16] (narrow) %v245_v19, 32 }
  0x58   : > { %262 = vxpose.xlu0.b32.end [16/16] (narrow) %v246_v20, 32 }
  0x9c   : > { %v263_v21 = vpop.trf.xlu0 }
  0x9d   : > { %v357_v23 = vmul.f32 %v263_v21, %v263_v21 }
  0xa0   : > { %v264_v22 = vpop.trf.xlu0 }
  0xa1   : > { %v358_v24 = vmul.f32 %v264_v22, %v264_v22  ;;  %v822_v25 = vpack.c.bf16 %v264_v22, %v263_v21 }
  0xa3   : > { %v361_v26 = vadd.f32 %v358_v24, %v357_v23  ;;  %823 = vmatpush3.bf16.msra.mxu0 %v822_v25 }
  0xa4   : > { %v265_v27 = vpop.trf.xlu0  ;;  %824 = vmatprep.subr.bf16.mxu0 %v1097_v6 }
  0xa5   : > { %v359_v28 = vmul.f32 %v265_v27, %v265_v27 }
  0xa7   : > { %v362_v29 = vadd.f32 %v361_v26, %v359_v28 }
  0xa8   : > { %v266_v30 = vpop.trf.xlu0 }
  0xa9   : > { %v825_v31 = vpack.c.bf16 %v266_v30, %v265_v27  ;;  %v360_v32 = vmul.f32 %v266_v30, %v266_v30 }
  0xab   : > { %v363_v33 = vadd.f32 %v362_v29, %v360_v32  ;;  %826 = vmatpush3.bf16.msra.mxu0 %v825_v31 }
  0xad   : > { %v364_v34 = vrot.slane %v363_v33, 4  ;;  %v356_v40 = vpop.xlane.xlu1 %355 }
  0xae   : > { %819 = vmatmul.mubr.msk.f32.vlgmr.msra.gmra.mrb[0].mxu0 %vm279_vm0, %v230_v1 }
  0xaf   : > { %v365_v35 = vadd.f32 %v364_v34, %v363_v33 }
  0xb1   : > { %v366_v36 = vrot.slane %v365_v35, 2 }
  0xb3   : > { %v367_v37 = vadd.f32 %v366_v36, %v365_v35 }
  0xb5   : > { %v368_v38 = vrot.slane %v367_v37, 1 }
  0xb7   : > { %v369_v39 = vadd.f32 %v368_v38, %v367_v37 }
  0xb9   : > { %v370_v42 = vadd.f32 %v369_v39, %v356_v40 }
 0x181   : > { %v349_v41 = vpop.f32.mrb[0].mxu0 }
 0x182   : > { %v371_v43 = vmul.f32 2.0, %v349_v41  ;;  %v820_v44 = vpop.f32.mrb[1].mxu0 }
 0x184   : > { %v372_v45 = vsub.f32 %v370_v42, %v371_v43 }
 0x186   : > { %v373_v46 = vmax.f32 %v372_v45, 0.0 }
 0x188   : > { %374 = vst [vmem:[%s1212_s12] sm:$0xff] %v373_v46  ;;  %v1215_v47 = vmul.f32 -10.0, %v373_v46 }
 0x189 LB: >> { %vm565_vm2 = vcmask 7168   ;;  %s577_s22 = sadd.s32 1, %s1095_s22   ;;  %s1095_s22 = sphi %s1226_s22, %s577_s22   ;;  %v1091_v49 = vphi %v1224_v49, %v540_v49   ;;  %v1087_v48 = vphi %v1222_v48, %v1364_v48  }
 0x18a   : >> { %v387_v50 = vadd.f32 %v1091_v49, %v1215_v47  ;;  %p381_p11 = scmp.lt.s32.totalorder %s577_s22, 10 }
 0x18c   : >> { %v388_v51 = vadd.f32 %v1087_v48, %v387_v50 }
 0x18e   : >> { %389 = vmax.xlane.f32.xlu0 %v388_v51 }
 0x21b   : >> { %v390_v52 = vpop.xlane.xlu0 %389 }
 0x21c   : >> { %v391_v53 = vsub.f32 %v388_v51, %v390_v52 }
 0x21e   : >> { %v392_v54 = vmul.f32 1.442695, %v391_v53 }
 0x220   : >> { %907 = vpow2.f32 %v392_v54 }
 0x22a   : >> { %v908_v55 = vpop.eup %907 }
 0x22b   : >> { %394 = vadd.xlane.f32.xlu0 %v908_v55 }
 0x2b8   : >> { %v395_v56 = vpop.xlane.xlu0 %394 }
 0x2b9   : >> { %909 = vlog2.f32 %v395_v56 }
 0x2c3   : >> { %v910_v57 = vpop.eup %909 }
 0x2c4   : >> { %v397_v58 = vmul.f32 0.6931472, %v910_v57 }
 0x2c6   : >> { %v398_v59 = vadd.f32 %v397_v58, %v390_v52 }
 0x2c8   : >> { %v399_v60 = vsub.f32 -2.0794415, %v398_v59 }
 0x2ca   : >> { %v400_v61 = vadd.f32 %v1091_v49, %v399_v60 }
 0x2cc   : >> { %v401_v62 = vadd.f32 %v400_v61, %v1215_v47 }
 0x2ce   : >> { %v402_v63 = vadd.f32 %v1087_v48, %v401_v62 }
 0x2d0   : >> { %v403_v0 = vrot.slane %v402_v63, 4 }
 0x2d2   : >> { %v404_v1 = vmax.f32 %v402_v63, %v403_v0 }
 0x2d4   : >> { %v405_v2 = vrot.slane %v404_v1, 2 }
 0x2d6   : >> { %v406_v3 = vmax.f32 %v404_v1, %v405_v2 }
 0x2d8   : >> { %v407_v4 = vrot.slane %v406_v3, 1 }
 0x2da   : >> { %v408_v5 = vmax.f32 %v406_v3, %v407_v4 }
 0x2dc   : >> { %v409_v6 = vsub.f32 %v402_v63, %v408_v5 }
 0x2de   : >> { %v410_v7 = vmul.f32 1.442695, %v409_v6 }
 0x2e0   : >> { %911 = vpow2.f32 %v410_v7 }
 0x2ea   : >> { %v912_v8 = vpop.eup %911 }
 0x2eb   : >> { %v412_v9 = vrot.slane %v912_v8, 4 }
 0x2ed   : >> { %v413_v10 = vadd.f32 %v912_v8, %v412_v9 }
 0x2ef   : >> { %v414_v11 = vrot.slane %v413_v10, 2 }
 0x2f1   : >> { %v415_v12 = vadd.f32 %v414_v11, %v413_v10 }
 0x2f3   : >> { %v416_v13 = vrot.slane %v415_v12, 1 }
 0x2f5   : >> { %v417_v14 = vadd.f32 %v416_v13, %v415_v12 }
 0x2f7   : >> { %913 = vlog2.f32 %v417_v14 }
 0x301   : >> { %v914_v15 = vpop.eup %913 }
 0x302   : >> { %v419_v16 = vmul.f32 0.6931472, %v914_v15 }
 0x304   : >> { %v420_v17 = vadd.f32 %v419_v16, %v408_v5 }
 0x306   : >> { %v421_v18 = vsub.f32 -4.852029, %v420_v17 }
 0x308   : >> { %v422_v19 = vadd.f32 %v1087_v48, %v421_v18 }
 0x30a   : >> { %v423_v20 = vadd.f32 %v422_v19, %v401_v62 }
 0x30c   : >> { %424 = vmax.xlane.f32.xlu1 %v423_v20 }
 0x399   : >> { %v425_v21 = vpop.xlane.xlu1 %424 }
 0x39a   : >> { %v426_v22 = vsub.f32 %v423_v20, %v425_v21 }
 0x39c   : >> { %v427_v23 = vmul.f32 1.442695, %v426_v22 }
 0x39e   : >> { %915 = vpow2.f32 %v427_v23 }
 0x3a8   : >> { %v916_v24 = vpop.eup %915 }
 0x3a9   : >> { %429 = vadd.xlane.f32.xlu1 %v916_v24 }
 0x436   : >> { %v430_v25 = vpop.xlane.xlu1 %429 }
 0x437   : >> { %917 = vlog2.f32 %v430_v25 }
 0x441   : >> { %v918_v26 = vpop.eup %917 }
 0x442   : >> { %v432_v27 = vmul.f32 0.6931472, %v918_v26 }
 0x444   : >> { %v433_v28 = vadd.f32 %v432_v27, %v425_v21 }
 0x446   : >> { %v434_v29 = vsub.f32 -2.0794415, %v433_v28 }
 0x448   : >> { %v435_v30 = vadd.f32 %v434_v29, %v400_v61 }
 0x44a   : >> { %v436_v31 = vadd.f32 %v435_v30, %v1215_v47 }
 0x44c   : >> { %v437_v32 = vadd.f32 %v436_v31, %v422_v19 }
 0x44e   : >> { %v438_v33 = vrot.slane %v437_v32, 4 }
 0x450   : >> { %v439_v34 = vmax.f32 %v437_v32, %v438_v33 }
 0x452   : >> { %v440_v35 = vrot.slane %v439_v34, 2 }
 0x454   : >> { %v441_v36 = vmax.f32 %v439_v34, %v440_v35 }
 0x456   : >> { %v442_v37 = vrot.slane %v441_v36, 1 }
 0x458   : >> { %v443_v38 = vmax.f32 %v441_v36, %v442_v37 }
 0x45a   : >> { %v444_v39 = vsub.f32 %v437_v32, %v443_v38 }
 0x45c   : >> { %v445_v40 = vmul.f32 1.442695, %v444_v39 }
 0x45e   : >> { %919 = vpow2.f32 %v445_v40 }
 0x468   : >> { %v920_v41 = vpop.eup %919 }
 0x469   : >> { %v447_v42 = vrot.slane %v920_v41, 4 }
 0x46b   : >> { %v448_v43 = vadd.f32 %v920_v41, %v447_v42 }
 0x46d   : >> { %v449_v44 = vrot.slane %v448_v43, 2 }
 0x46f   : >> { %v450_v45 = vadd.f32 %v449_v44, %v448_v43 }
 0x471   : >> { %v451_v46 = vrot.slane %v450_v45, 1 }
 0x473   : >> { %v452_v48 = vadd.f32 %v451_v46, %v450_v45 }
 0x475   : >> { %921 = vlog2.f32 %v452_v48 }
 0x47f   : >> { %v922_v49 = vpop.eup %921 }
 0x480   : >> { %v454_v50 = vmul.f32 0.6931472, %v922_v49 }
 0x482   : >> { %v455_v51 = vadd.f32 %v454_v50, %v443_v38 }
 0x484   : >> { %v456_v52 = vsub.f32 -4.852029, %v455_v51 }
 0x486   : >> { %v457_v53 = vadd.f32 %v456_v52, %v422_v19 }
 0x488   : >> { %v458_v54 = vadd.f32 %v457_v53, %v436_v31 }
 0x48a   : >> { %459 = vmax.xlane.f32.xlu0 %v458_v54 }
 0x517   : >> { %v460_v55 = vpop.xlane.xlu0 %459 }
 0x518   : >> { %v461_v56 = vsub.f32 %v458_v54, %v460_v55 }
 0x51a   : >> { %v462_v57 = vmul.f32 1.442695, %v461_v56 }
 0x51c   : >> { %923 = vpow2.f32 %v462_v57 }
 0x526   : >> { %v924_v58 = vpop.eup %923 }
 0x527   : >> { %464 = vadd.xlane.f32.xlu1 %v924_v58 }
 0x5b4   : >> { %v465_v59 = vpop.xlane.xlu1 %464 }
 0x5b5   : >> { %925 = vlog2.f32 %v465_v59 }
 0x5bf   : >> { %v926_v60 = vpop.eup %925 }
 0x5c0   : >> { %v467_v61 = vmul.f32 0.6931472, %v926_v60 }
 0x5c2   : >> { %v468_v62 = vadd.f32 %v467_v61, %v460_v55 }
 0x5c4   : >> { %v469_v63 = vsub.f32 -2.0794415, %v468_v62 }
 0x5c6   : >> { %v470_v0 = vadd.f32 %v469_v63, %v435_v30 }
 0x5c8   : >> { %v471_v1 = vadd.f32 %v470_v0, %v1215_v47 }
 0x5ca   : >> { %v472_v2 = vadd.f32 %v471_v1, %v457_v53 }
 0x5cc   : >> { %v473_v3 = vrot.slane %v472_v2, 4 }
 0x5ce   : >> { %v474_v4 = vmax.f32 %v472_v2, %v473_v3 }
 0x5d0   : >> { %v475_v5 = vrot.slane %v474_v4, 2 }
 0x5d2   : >> { %v476_v6 = vmax.f32 %v474_v4, %v475_v5 }
 0x5d4   : >> { %v477_v7 = vrot.slane %v476_v6, 1 }
 0x5d6   : >> { %v478_v8 = vmax.f32 %v476_v6, %v477_v7 }
 0x5d8   : >> { %v479_v9 = vsub.f32 %v472_v2, %v478_v8 }
 0x5da   : >> { %v480_v10 = vmul.f32 1.442695, %v479_v9 }
 0x5dc   : >> { %927 = vpow2.f32 %v480_v10 }
 0x5e6   : >> { %v928_v11 = vpop.eup %927 }
 0x5e7   : >> { %v482_v12 = vrot.slane %v928_v11, 4 }
 0x5e9   : >> { %v483_v13 = vadd.f32 %v928_v11, %v482_v12 }
 0x5eb   : >> { %v484_v14 = vrot.slane %v483_v13, 2 }
 0x5ed   : >> { %v485_v15 = vadd.f32 %v484_v14, %v483_v13 }
 0x5ef   : >> { %v486_v16 = vrot.slane %v485_v15, 1 }
 0x5f1   : >> { %v487_v17 = vadd.f32 %v486_v16, %v485_v15 }
 0x5f3   : >> { %929 = vlog2.f32 %v487_v17 }
 0x5fd   : >> { %v930_v18 = vpop.eup %929 }
 0x5fe   : >> { %v489_v19 = vmul.f32 0.6931472, %v930_v18 }
 0x600   : >> { %v490_v20 = vadd.f32 %v489_v19, %v478_v8 }
 0x602   : >> { %v491_v21 = vsub.f32 -4.852029, %v490_v20 }
 0x604   : >> { %v492_v22 = vadd.f32 %v491_v21, %v457_v53 }
 0x606   : >> { %v493_v23 = vadd.f32 %v492_v22, %v471_v1 }
 0x608   : >> { %494 = vmax.xlane.f32.xlu0 %v493_v23 }
 0x695   : >> { %v495_v24 = vpop.xlane.xlu0 %494 }
 0x696   : >> { %v496_v25 = vsub.f32 %v493_v23, %v495_v24 }
 0x698   : >> { %v497_v26 = vmul.f32 1.442695, %v496_v25 }
 0x69a   : >> { %931 = vpow2.f32 %v497_v26 }
 0x6a4   : >> { %v932_v27 = vpop.eup %931 }
 0x6a5   : >> { %499 = vadd.xlane.f32.xlu1 %v932_v27 }
 0x732   : >> { %v500_v28 = vpop.xlane.xlu1 %499 }
 0x733   : >> { %933 = vlog2.f32 %v500_v28 }
 0x73d   : >> { %v934_v29 = vpop.eup %933 }
 0x73e   : >> { %v502_v30 = vmul.f32 0.6931472, %v934_v29 }
 0x740   : >> { %v503_v31 = vadd.f32 %v502_v30, %v495_v24 }
 0x742   : >> { %v504_v32 = vsub.f32 -2.0794415, %v503_v31 }
 0x744   : >> { %v505_v33 = vadd.f32 %v504_v32, %v470_v0 }
 0x746   : >> { %v506_v34 = vadd.f32 %v505_v33, %v1215_v47 }
 0x748   : >> { %v507_v35 = vadd.f32 %v506_v34, %v492_v22 }
 0x74a   : >> { %v508_v36 = vrot.slane %v507_v35, 4 }
 0x74c   : >> { %v509_v37 = vmax.f32 %v507_v35, %v508_v36 }
 0x74e   : >> { %v510_v38 = vrot.slane %v509_v37, 2 }
 0x750   : >> { %v511_v39 = vmax.f32 %v509_v37, %v510_v38 }
 0x752   : >> { %v512_v40 = vrot.slane %v511_v39, 1 }
 0x754   : >> { %v513_v41 = vmax.f32 %v511_v39, %v512_v40 }
 0x756   : >> { %v514_v42 = vsub.f32 %v507_v35, %v513_v41 }
 0x758   : >> { %v515_v43 = vmul.f32 1.442695, %v514_v42 }
 0x75a   : >> { %935 = vpow2.f32 %v515_v43 }
 0x764   : >> { %v936_v44 = vpop.eup %935 }
 0x765   : >> { %v517_v45 = vrot.slane %v936_v44, 4 }
 0x767   : >> { %v518_v46 = vadd.f32 %v936_v44, %v517_v45 }
 0x769   : >> { %v519_v48 = vrot.slane %v518_v46, 2 }
 0x76b   : >> { %v520_v49 = vadd.f32 %v519_v48, %v518_v46 }
 0x76d   : >> { %v521_v50 = vrot.slane %v520_v49, 1 }
 0x76f   : >> { %v522_v51 = vadd.f32 %v521_v50, %v520_v49 }
 0x771   : >> { %937 = vlog2.f32 %v522_v51 }
 0x77b   : >> { %v938_v52 = vpop.eup %937 }
 0x77c   : >> { %v524_v53 = vmul.f32 0.6931472, %v938_v52 }
 0x77e   : >> { %v525_v54 = vadd.f32 %v524_v53, %v513_v41 }
 0x780   : >> { %v526_v55 = vsub.f32 -4.852029, %v525_v54 }
 0x782   : >> { %v527_v56 = vadd.f32 %v526_v55, %v492_v22 }
 0x784   : >> { %v528_v57 = vadd.f32 %v527_v56, %v506_v34 }
 0x786   : >> { %529 = vmax.xlane.f32.xlu0 %v528_v57 }
 0x813   : >> { %v530_v58 = vpop.xlane.xlu0 %529 }
 0x814   : >> { %v531_v59 = vsub.f32 %v528_v57, %v530_v58 }
 0x816   : >> { %v532_v60 = vmul.f32 1.442695, %v531_v59 }
 0x818   : >> { %939 = vpow2.f32 %v532_v60 }
 0x822   : >> { %v940_v61 = vpop.eup %939 }
 0x823   : >> { %534 = vadd.xlane.f32.xlu1 %v940_v61 }
 0x8b0   : >> { %v535_v62 = vpop.xlane.xlu1 %534 }
 0x8b1   : >> { %941 = vlog2.f32 %v535_v62 }
 0x8bb   : >> { %v942_v63 = vpop.eup %941 }
 0x8bc   : >> { %v537_v0 = vmul.f32 0.6931472, %v942_v63 }
 0x8be   : >> { %v538_v1 = vadd.f32 %v537_v0, %v530_v58 }
 0x8c0   : >> { %v539_v2 = vsub.f32 -2.0794415, %v538_v1 }
 0x8c2   : >> { %v540_v49 = vadd.f32 %v539_v2, %v505_v33  }
 0x8c4   : >> { %v563_v3 = vsub.f32 %v540_v49, %v505_v33  ;;  %v541_v4 = vadd.f32 %v540_v49, %v1215_v47 }
 0x8c6   : >> { %v564_v5 = vand.u32 2147483647, %v563_v3  ;;  %v542_v6 = vadd.f32 %v541_v4, %v527_v56 }
 0x8c8   : >> { %v566_v7 = vsel %vm565_vm2, %v564_v5, 0.0  ;;  %v543_v8 = vrot.slane %v542_v6, 4 }
 0x8c9   : >> { %567 = vadd.xlane.f32.xlu0 %v566_v7 }
 0x8ca   : >> { %v544_v9 = vmax.f32 %v542_v6, %v543_v8 }
 0x8cc   : >> { %v545_v10 = vrot.slane %v544_v9, 2 }
 0x8ce   : >> { %v546_v11 = vmax.f32 %v544_v9, %v545_v10 }
 0x8d0   : >> { %v547_v12 = vrot.slane %v546_v11, 1 }
 0x8d2   : >> { %v548_v13 = vmax.f32 %v546_v11, %v547_v12 }
 0x8d4   : >> { %v549_v14 = vsub.f32 %v542_v6, %v548_v13 }
 0x8d6   : >> { %v550_v15 = vmul.f32 1.442695, %v549_v14 }
 0x8d8   : >> { %943 = vpow2.f32 %v550_v15 }
 0x8e2   : >> { %v944_v16 = vpop.eup %943 }
 0x8e3   : >> { %v552_v17 = vrot.slane %v944_v16, 4 }
 0x8e5   : >> { %v553_v18 = vadd.f32 %v944_v16, %v552_v17 }
 0x8e7   : >> { %v554_v19 = vrot.slane %v553_v18, 2 }
 0x8e9   : >> { %v555_v20 = vadd.f32 %v554_v19, %v553_v18 }
 0x8eb   : >> { %v556_v21 = vrot.slane %v555_v20, 1 }
 0x8ed   : >> { %v557_v22 = vadd.f32 %v556_v21, %v555_v20 }
 0x8ef   : >> { %945 = vlog2.f32 %v557_v22 }
 0x8f9   : >> { %v946_v23 = vpop.eup %945 }
 0x8fa   : >> { %v559_v24 = vmul.f32 0.6931472, %v946_v23 }
 0x8fc   : >> { %v560_v25 = vadd.f32 %v559_v24, %v548_v13 }
 0x8fe   : >> { %v561_v26 = vsub.f32 -4.852029, %v560_v25 }
 0x900   : >> { %v562_v27 = vadd.f32 %v561_v26, %v527_v56  }
 0x902   : >> { %v1364_v48 = vmov %v562_v27 }
 0x956   : >> { %v568_v28 = vpop.xlane.xlu0 %567 }
 0x957   : >> { %v569_v29 = vrot.slane %v568_v28, 4 }
 0x959   : >> { %v570_v30 = vadd.f32 %v569_v29, %v568_v28 }
 0x95b   : >> { %v571_v31 = vrot.slane %v570_v30, 2 }
 0x95d   : >> { %v572_v32 = vadd.f32 %v571_v31, %v570_v30 }
 0x95f   : >> { %v573_v33 = vrot.slane %v572_v32, 1 }
 0x961   : >> { %v574_v34 = vadd.f32 %v573_v33, %v572_v32 }
 0x963   : >> { %827 = vpush %v574_v34 }
 0x994   : >> { %s828_s23 = spop %827 }
 0x995   : >> { %s576_s27 = smul.f32 0.1, %s828_s23 }
 0x997   : >> { %p382_p12 = scmp.ge.f32.partialorder %s576_s27, 0.1 }
 0x999   : >> { %p383_p13 = pnand %p382_p12, %p381_p11 }
 0x99a   : > { %v579_v35 = vadd.f32 (%p383_p13), %v562_v27, %v541_v4  ;;  %v583_v37 = vld [vmem:[%s1212_s12] sm:$0xff] (%p383_p13)  ;;  %s600_s28 = sand.u32 (%p383_p13), 1, %s1149_s19   ;;  %s800_s29 = sshll.u32 (%p383_p13), %s1149_s19, 7 }
 0x99b   : > { %386 = sbr.rel (!%p383_p13) target bundleno = 393 (0x189), region = 105  ;;  %s1255_s6 = scalar_lea.hbm (%p383_p13), %s1360_s3, %s800_s29 }
 0x99c   : > { %v580_v36 = vmul.f32 (%p383_p13), 1.442695, %v579_v35  ;;  %s632_s7 = sshll.u32 (%p383_p13), %s1220_s14, 4  ;;  %s1258_s8 = scalar_lea.sflag (%p383_p13), [#allocation5], %s600_s28  ;;  %s633_s7 = int_to_ptr.vmem [resolvable:$true] %s632_s7 }
 0x99d   : > { %s949_s9 = scalar_lea.vmem (%p383_p13), %s633_s7, 128  ;;  %s1100_s11 = smov (%p383_p13), [#allocation4]  }
 0x99e   : > { %947 = vpow2.f32 (%p383_p13), %v580_v36  ;;  %p950_p0 = scmp.ne.s32.totalorder (%p383_p13), %s633_s7, %s949_s9  ;;  %s953_s22 = sshll.u32 (%p383_p13), %s1100_s11, 4  ;;  %s954_s22 = int_to_ptr.vmem [resolvable:$false] %s953_s22 }
 0x99f   : > { %s955_s23 = scalar_lea.vmem (%p383_p13), %s954_s22, 256  ;;  %p956_p3 = scmp.lt.s32.totalorder (%p383_p13), %s633_s7, %s954_s22 }
 0x9a0   : > { %p951_p1 = pnand (%p383_p13), %p950_p0, %p1168_p5  ;;  %p957_p4 = scmp.lt.s32.totalorder (%p383_p13), %s955_s23, %s949_s9 }
 0x9a2   : > { %p952_p2 = pneg %p951_p1  ;;  %p958_p7 = por %p957_p4, %p956_p3 }
 0x9a4   : > { %p959_p8 = pnand %p958_p7, %p952_p2 }
 0x9a8   : > { %v948_v38 = vpop.eup %947 }
 0x9a9   : > { %v584_v39 = vmul.f32 %v948_v38, %v583_v37  ;;  %582 = vst [vmem:[%s1220_s14] sm:$0xff] %v948_v38 }
 0x9ab   : > { %585 = vadd.xlane.f32.xlu0 %v584_v39 }
 0x9ac   : > { %962 = shalt.err (!%p959_p8)
}
 0x9ad   : > { %s963_s14 = scalar_lea.hbm %s1255_s6, 128  ;;  %s967_s30 = scalar_lea.hbm %s1360_s3, 256 }
 0x9ae   : > { %p964_p9 = scmp.ne.s32.totalorder %s1255_s6, %s963_s14  ;;  %p968_p12 = scmp.lt.u32.totalorder %s1255_s6, %s1360_s3 }
 0x9af   : > { %p969_p13 = scmp.lt.u32.totalorder %s967_s30, %s963_s14  ;;  %p971_p1 = scmp.lt.u32.totalorder %s963_s14, %s1255_s6 }
 0x9b0   : > { %p965_p10 = pnand %p964_p9, %p1168_p5 }
 0x9b1   : > { %p970_p0 = por %p969_p13, %p968_p12 }
 0x9b2   : > { %p966_p11 = pneg %p965_p10 }
 0x9b3   : > { %p972_p2 = por %p971_p1, %p970_p0 }
 0x9b5   : > { %p973_p3 = pnand %p972_p2, %p966_p11 }
 0x9b7   : > { %976 = shalt.err (!%p973_p3)
}
 0x9b8   : > { %832 = dma.vmem_to_hbm [thread:$0]  (%p1168_p5), %s633_s7, 128, %s1255_s6, %s1258_s8  }
 0x9b9   : > { %s1283_s23 = scalar_lea.hbm %s1361_s4, %s800_s29  ;;  %s645_s27 = sshll.u32 %s1212_s12, 4  ;;  %s646_s27 = int_to_ptr.vmem [resolvable:$true] %s645_s27 }
 0x9ba   : > { %s977_s14 = scalar_lea.vmem %s646_s27, 128  ;;  %s1101_s28 = smov [#allocation6]  }
 0x9bb   : > { %p978_p4 = scmp.ne.s32.totalorder %s646_s27, %s977_s14  ;;  %s981_s30 = sshll.u32 %s1101_s28, 4  ;;  %s982_s30 = int_to_ptr.vmem [resolvable:$false] %s981_s30 }
 0x9bc   : > { %s983_s5 = scalar_lea.vmem %s982_s30, 256  ;;  %p984_p9 = scmp.lt.s32.totalorder %s646_s27, %s982_s30 }
 0x9bd   : > { %p979_p7 = pnand %p978_p4, %p1168_p5  ;;  %p985_p10 = scmp.lt.s32.totalorder %s983_s5, %s977_s14 }
 0x9bf   : > { %p980_p8 = pneg %p979_p7  ;;  %p986_p11 = por %p985_p10, %p984_p9 }
 0x9c1   : > { %p987_p12 = pnand %p986_p11, %p980_p8 }
 0x9c3   : > { %990 = shalt.err (!%p987_p12)
}
 0x9c4   : > { %s991_s12 = scalar_lea.hbm %s1283_s23, 128  ;;  %s995_s7 = scalar_lea.hbm %s1361_s4, 256 }
 0x9c5   : > { %p992_p13 = scmp.ne.s32.totalorder %s1283_s23, %s991_s12  ;;  %p996_p2 = scmp.lt.u32.totalorder %s1283_s23, %s1361_s4 }
 0x9c6   : > { %p997_p3 = scmp.lt.u32.totalorder %s995_s7, %s991_s12  ;;  %p999_p7 = scmp.lt.u32.totalorder %s991_s12, %s1283_s23 }
 0x9c7   : > { %p993_p0 = pnand %p992_p13, %p1168_p5 }
 0x9c8   : > { %p998_p4 = por %p997_p3, %p996_p2 }
 0x9c9   : > { %p994_p1 = pneg %p993_p0 }
 0x9ca   : > { %p1000_p8 = por %p999_p7, %p998_p4 }
 0x9cc   : > { %p1001_p9 = pnand %p1000_p8, %p994_p1 }
 0x9ce   : > { %1004 = shalt.err (!%p1001_p9)
}
 0x9cf   : > { %833 = dma.vmem_to_hbm [thread:$0]  (%p1168_p5), %s646_s27, 128, %s1283_s23, %s1258_s8  }
 0x9d0   : > { %s799_s22 = sshll.u32 %s1149_s19, 4  ;;  %s619_s14 = sshll.u32 %s206_s13, 4  ;;  %s1312_s14 = int_to_ptr.vmem [resolvable:$true] %s619_s14 }
 0x9d1   : > { %s1310_s5 = scalar_lea.hbm %s1359_s2, %s799_s22  ;;  %s597_s8 = scalar_lea.sflag [#allocation3], %s1199_s10 }
 0x9d2   : > { %s1005_s23 = scalar_lea.vmem %s1312_s14, 16  ;;  %s1102_s19 = smov [#allocation2]  }
 0x9d3   : > { %p1006_p10 = scmp.ne.s32.totalorder %s1312_s14, %s1005_s23  ;;  %s1009_s27 = sshll.u32 %s1102_s19, 4  ;;  %s1010_s27 = int_to_ptr.vmem [resolvable:$false] %s1009_s27 }
 0x9d4   : > { %s1011_s29 = scalar_lea.vmem %s1010_s27, 32  ;;  %p1012_p13 = scmp.lt.s32.totalorder %s1312_s14, %s1010_s27 }
 0x9d5   : > { %p1007_p11 = pnand %p1006_p10, %p1168_p5  ;;  %p1013_p0 = scmp.lt.s32.totalorder %s1011_s29, %s1005_s23 }
 0x9d7   : > { %p1008_p12 = pneg %p1007_p11  ;;  %p1014_p1 = por %p1013_p0, %p1012_p13 }
 0x9d9   : > { %p1015_p2 = pnand %p1014_p1, %p1008_p12 }
 0xa38   : > { %v586_v47 = vpop.xlane.xlu0 %585 }
 0xa39   : > { %v587_v40 = vrot.slane %v586_v47, 4 }
 0xa3b   : > { %v588_v41 = vadd.f32 %v587_v40, %v586_v47 }
 0xa3d   : > { %v589_v42 = vrot.slane %v588_v41, 2 }
 0xa3f   : > { %v590_v43 = vadd.f32 %v589_v42, %v588_v41 }
 0xa41   : > { %v591_v44 = vrot.slane %v590_v43, 1 }
 0xa43   : > { %v592_v45 = vadd.f32 %v591_v44, %v590_v43 }
 0xa45   : > { %829 = vpush %v592_v45 }
 0xa76   : > { %s830_s12 = spop %829 }
 0xa77   : > { %v594_v46 = vstv %s830_s12 }
 0xa78   : > { %595 = vst [vmem:[%s206_s13] sm:$0x1] %v594_v46 }
 0xa79   : > { %1018 = shalt.err (!%p1015_p2)
}
 0xa7a   : > { %s1019_s10 = scalar_lea.hbm %s1310_s5, 16  ;;  %s1023_s7 = scalar_lea.hbm %s1359_s2, 32 }
 0xa7b   : > { %p1020_p3 = scmp.ne.s32.totalorder %s1310_s5, %s1019_s10  ;;  %p1024_p8 = scmp.lt.u32.totalorder %s1310_s5, %s1359_s2 }
 0xa7c   : > { %p1025_p9 = scmp.lt.u32.totalorder %s1023_s7, %s1019_s10  ;;  %p1027_p11 = scmp.lt.u32.totalorder %s1019_s10, %s1310_s5 }
 0xa7d   : > { %p1021_p4 = pnand %p1020_p3, %p1168_p5 }
 0xa7e   : > { %p1026_p10 = por %p1025_p9, %p1024_p8 }
 0xa7f   : > { %p1022_p7 = pneg %p1021_p4 }
 0xa80   : > { %p1028_p12 = por %p1027_p11, %p1026_p10 }
 0xa82   : > { %p1029_p13 = pnand %p1028_p12, %p1022_p7 }
 0xa84   : > { %1032 = shalt.err (!%p1029_p13)
}
 0xa85   : > { %831 = dma.vmem_to_hbm [thread:$0]  (%p1168_p5), %s1312_s14, 16, %s1310_s5, %s597_s8  }
 0xa86 PF: > { %p847_p0 = scmp.ge.s32.totalorder %s1083_s18, 2  ;;  %s657_s22 = sand.u32 1, %s1071_s15  }
 0xa87   : > { %s658_s28 = scalar_lea.sflag [#allocation3], %s657_s22 }
 0xa88   : > { %p838_p1 = pnand %p847_p0, %p1172_p6 }
 0xa8a   : > { %1062 = dma.done.wait (!%p838_p1), %s658_s28, 16  }
 0xa8b   : > { %1064 = vsyncadd (!%p838_p1), %s658_s28, 4294967280  ;;  %s665_s30 = sand.u32 1, %s787_s20  }
 0xa8c   : > { %s666_s12 = scalar_lea.sflag [#allocation5], %s665_s30 }
 0xa8d   : > { %1066 = dma.done.wait (!%p838_p1), %s666_s12, 256  }
 0xa8e   : > { %1068 = vsyncadd (!%p838_p1), %s666_s12, 4294967040  ;;  %p18_p5 = scmp.ge.s32.totalorder %s1153_s21, 4   ;;  %s1365_s15 = smov %s1075_s16 }
 0xa8f   : > { %s1366_s16 = smov %s1079_s17  ;;  %s1367_s17 = smov %s1166_s24 }
 0xa90   : > { %s1368_s18 = smov %s1153_s21  ;;  %20 = sbr.rel (!%p18_p5) target bundleno = 5 (0x5), region = 116 }
 0xa97   :  { %680 = vsyncpa [#allocation3], 1 }
 0xa98   :  { %682 = vsyncpa [#allocation3 + $0x1], 1 }
 0xa99   :  { %683 = vsyncpa [#allocation5], 1 }
 0xa9a   :  { %685 = vsyncpa [#allocation5 + $0x1], 1 }

</bundles_post_ra>
